<compile_context>
chip_gen: v7x
topology: tpu7x:2x2x1
jax: 0.10.0
libtpu: 0.0.40
codegen_flags: <defaults>
</compile_context>

<pallas_src>
import functools

import numpy as np
import jax
import jax.numpy as jnp
from jax.experimental import pallas as pl
from jax.experimental.pallas import tpu as pltpu

FILT_DICT = {
    1: np.array([1.0]),
    2: np.array([1.0, 1.0]),
    3: np.array([1.0, 2.0, 1.0]),
    4: np.array([1.0, 3.0, 3.0, 1.0]),
    5: np.array([1.0, 4.0, 6.0, 4.0, 1.0]),
    6: np.array([1.0, 5.0, 10.0, 10.0, 5.0, 1.0]),
    7: np.array([1.0, 6.0, 15.0, 20.0, 15.0, 6.0, 1.0]),
}

_LC_MAX = 2048          # max output-column tile (lanes)
_HALO = 128             # per-slab column halo (>= max tap offset, lane aligned)


def _round_up(x, m):
    return (x + m - 1) // m * m


def _cdiv(a, b):
    return -(-a // b)


def _vmem_capacity_bytes():
    """Physical VMEM per TensorCore; conservative fallback (v7x) if unknown."""
    try:
        cap = getattr(pltpu.get_tpu_info(), "vmem_capacity_bytes", None)
        if cap:
            return int(cap)
    except Exception:
        pass
    return 64 * 1024 * 1024


def _blurpool_rows_kernel(*refs, taps, n_phases, lc):
    """refs = (phase_0, ..., phase_{P-1}, out).

    Each phase ref is a (tm, lc + _HALO) tile; out is (tm, lc).
    taps: tuple of (weight: float, phase_index: int, col_offset: int).
    Phase tiles are cast to f32 once; tap offsets are realized with pltpu.roll
    (XLU) followed by a free tile-aligned [:, :lc] slice — the wrapped-around
    lanes land in the discarded halo columns (col_offset < _HALO).
    """
    out_ref = refs[n_phases]
    cached = [None] * n_phases
    acc = None
    for w, idx, q in taps:
        if cached[idx] is None:
            cached[idx] = refs[idx][...].astype(jnp.float32)
        ph = cached[idx]
        if q == 0:
            term = ph[:, :lc]
        else:
            width = ph.shape[-1]
            term = pltpu.roll(ph, shift=width - q, axis=1)[:, :lc]
        t = w * term
        acc = t if acc is None else acc + t
    out_ref[...] = acc.astype(out_ref.dtype)


def blurpool1d(inp, *, channels, pad_type="reflect", filt_size=3, stride=2,
               pad_off=0, row_tile=None):
    """Pallas implementation of BlurPool1D.forward.

    inp: (N, C, L) array (NCL layout, matching PyTorch NCW conv1d input).
    Returns (N, C, L_out) with the same dtype as `inp`.
    """
    assert inp.ndim == 3 and inp.shape[1] == channels
    N, C, L = inp.shape
    dtype = inp.dtype

    pad_l = int(1.0 * (filt_size - 1) / 2) + pad_off
    pad_r = int(np.ceil(1.0 * (filt_size - 1) / 2)) + pad_off

    # --- padding (wrapper glue; eligible for pallas input fusion) -------------
    if pad_l == 0 and pad_r == 0:
        x_pad = inp
    else:
        mode = {"refl": "reflect", "reflect": "reflect",
                "repl": "edge", "replicate": "edge",
                "zero": "constant"}.get(pad_type)
        if mode is None:
            raise ValueError(f"Pad type [{pad_type}] not recognized")
        x_pad = jnp.pad(inp, ((0, 0), (0, 0), (pad_l, pad_r)), mode=mode)

    L_pad = L + pad_l + pad_r

    # --- filter taps as trace-time constants (no W array, no HBM traffic) -----
    a = FILT_DICT[filt_size]
    filt = (a / a.sum()).astype(np.float32)

    L_out = (L_pad - filt_size) // stride + 1
    assert L_out >= 1, "input too short for this filter/stride"

    # Polyphase split: tap k reads phase (k % stride) at column offset k//stride.
    used_phases = sorted({k % stride for k in range(filt_size)})
    phase_index = {p: i for i, p in enumerate(used_phases)}
    taps = tuple((float(filt[k]), phase_index[k % stride], k // stride)
                 for k in range(filt_size))
    n_ph = len(used_phases)

    # --- column tiling (lane-dense, with halo) --------------------------------
    Lo_pad = _round_up(L_out, 128)
    if Lo_pad <= _LC_MAX:
        lc, n_ct = Lo_pad, 1
    else:
        lc = _LC_MAX
        n_ct = _cdiv(L_out, lc)
    Lo_total = n_ct * lc
    W = lc + _HALO                      # per-slab input width (tap headroom)
    total_w = Lo_total + _HALO

    # --- per-generation VMEM budget & row tile --------------------------------
    vmem_cap = _vmem_capacity_bytes()                       # 128 MiB v5e/v6e, 64 MiB v7x
    vmem_limit = max(32 << 20, min(int(vmem_cap * 0.75), 96 << 20))
    budget = max(6 << 20, min(vmem_limit - (16 << 20), 40 << 20))

    itemsize = jnp.dtype(dtype).itemsize
    sub_mult = max(8, 32 // max(1, itemsize))               # 8 f32 / 16 bf16 / 32 int8
    io_per_row = 2 * (n_ph * W + lc) * itemsize             # double-buffered HBM-dtype IO
    f32_per_row = (n_ph * W + W + lc) * 4                   # cached casts + rolled tmp + acc
    per_row = io_per_row + f32_per_row

    if row_tile is None:
        tm = budget // per_row
        tm = max(sub_mult, min(2048, (tm // sub_mult) * sub_mult))
    else:
        tm = max(sub_mult, _round_up(row_tile, sub_mult))
    tm = min(tm, _round_up(_cdiv(N * C, 1), sub_mult))
    if n_ct == 1 and N * C > sub_mult:
        # guarantee >= 2 parallel grid steps so both v7x TensorCores get work
        tm = min(tm, _round_up(_cdiv(N * C, 2), sub_mult))
    tm = max(tm, sub_mult)

    NC = N * C
    n_row_tiles = _cdiv(NC, tm)
    tm = _round_up(_cdiv(NC, n_row_tiles), sub_mult)        # minimize row padding
    NC_pad = tm * n_row_tiles

    # --- build halo'd phase slabs: (n_ct, NC_pad, lc + HALO) -------------------
    x2d = x_pad.reshape(NC, L_pad)
    slabs = []
    for p in used_phases:
        ph = x2d[:, p::stride]
        ph = jnp.pad(ph, ((0, NC_pad - NC), (0, total_w - ph.shape[1])))
        slab = jnp.stack([ph[:, t * lc: t * lc + W] for t in range(n_ct)], axis=0)
        slabs.append(slab)

    kernel = functools.partial(_blurpool_rows_kernel,
                               taps=taps, n_phases=n_ph, lc=lc)

    out2d = pl.pallas_call(
        kernel,
        out_shape=jax.ShapeDtypeStruct((NC_pad, Lo_total), dtype),
        grid_spec=pltpu.PrefetchScalarGridSpec(
            num_scalar_prefetch=0,
            grid=(n_row_tiles, n_ct),
            in_specs=[pl.BlockSpec((None, tm, W), lambda i, j: (j, i, 0))
                      for _ in range(n_ph)],
            out_specs=pl.BlockSpec((tm, lc), lambda i, j: (i, j)),
        ),
        compiler_params=pltpu.CompilerParams(
            dimension_semantics=("parallel", "parallel"),
            vmem_limit_bytes=int(vmem_limit),
            allow_input_fusion=[True] * n_ph,
        ),
    )(*slabs)

    return out2d[:NC, :L_out].reshape(N, C, L_out)


def blurpool1d_ref(inp, *, channels, pad_type="reflect", filt_size=3, stride=2,
                   pad_off=0):
    """Pure-JAX reference (mirrors the PyTorch forward)."""
    pad_l = int(1.0 * (filt_size - 1) / 2) + pad_off
    pad_r = int(np.ceil(1.0 * (filt_size - 1) / 2)) + pad_off
    if filt_size == 1:
        if pad_off == 0:
            return inp[:, :, ::stride]
        x_pad = jnp.pad(inp, ((0, 0), (0, 0), (pad_l, pad_r)), mode="reflect")
        return x_pad[:, :, ::stride]
    mode = {"reflect": "reflect", "refl": "reflect",
            "replicate": "edge", "repl": "edge",
            "zero": "constant"}[pad_type]
    x_pad = jnp.pad(inp, ((0, 0), (0, 0), (pad_l, pad_r)), mode=mode)
    a = FILT_DICT[filt_size]
    filt = jnp.asarray(a / a.sum(), dtype=jnp.float32)
    L_pad = x_pad.shape[-1]
    L_out = (L_pad - filt_size) // stride + 1
    out = jnp.zeros(inp.shape[:2] + (L_out,), dtype=jnp.float32)
    for k in range(filt_size):
        out = out + filt[k] * x_pad[:, :, k: k + stride * L_out: stride].astype(jnp.float32)
    return out.astype(inp.dtype)


if __name__ == "__main__":
    key = jax.random.PRNGKey(0)
    N, C, L = 2, 4, 16
    x = jax.random.normal(key, (N, C, L), dtype=jnp.float32)

    # default config: reflect pad, 3-tap binomial, stride 2
    out = blurpool1d(x, channels=C, pad_type="reflect", filt_size=3, stride=2)
    out = jax.block_until_ready(out)
    ref = blurpool1d_ref(x, channels=C, pad_type="reflect", filt_size=3, stride=2)
    assert out.shape == (N, C, 8), out.shape
    np.testing.assert_allclose(np.asarray(out), np.asarray(ref),
                               rtol=1e-5, atol=1e-5)

    # secondary config: 5-tap, zero padding (exercises multi-offset taps / zero pad)
    out5 = blurpool1d(x, channels=C, pad_type="zero", filt_size=5, stride=2)
    out5 = jax.block_until_ready(out5)
    ref5 = blurpool1d_ref(x, channels=C, pad_type="zero", filt_size=5, stride=2)
    np.testing.assert_allclose(np.asarray(out5), np.asarray(ref5),
                               rtol=1e-5, atol=1e-5)

    print("KERNEL_OK")
</pallas_src>

<mosaic_0001>
module attributes {stable_mosaic.version = 11 : i64} {
  func.func @_blurpool_rows_kernel(%arg0: i32, %arg1: i32, %arg2: memref<1x8x256xf32, #tpu.memory_space<vmem>>, %arg3: memref<1x8x256xf32, #tpu.memory_space<vmem>>, %arg4: memref<8x128xf32, #tpu.memory_space<vmem>>) attributes {dimension_semantics = [#tpu.dimension_semantics<parallel>, #tpu.dimension_semantics<parallel>], iteration_bounds = array<i64: 1, 1>, scalar_prefetch = 0 : i64, scratch_operands = 0 : i64, tpu.core_type = #tpu.core_type<tc>, window_params = [{transform_indices = @transform_0, window_bounds = array<i64: 1, 8, 256>}, {transform_indices = @transform_1, window_bounds = array<i64: 1, 8, 256>}, {transform_indices = @transform_2, window_bounds = array<i64: 8, 128>}]} {
    %c0 = arith.constant 0 : index
    %c0_0 = arith.constant 0 : index
    %c0_1 = arith.constant 0 : index
    %0 = vector.load %arg2[%c0, %c0_0, %c0_1] : memref<1x8x256xf32, #tpu.memory_space<vmem>>, vector<1x8x256xf32>
    %1 = vector.shape_cast %0 : vector<1x8x256xf32> to vector<8x256xf32>
    %2 = vector.extract_strided_slice %1 {offsets = [0, 0], sizes = [8, 128], strides = [1, 1]} : vector<8x256xf32> to vector<8x128xf32>
    %cst = arith.constant 2.500000e-01 : f32
    %3 = vector.broadcast %cst : f32 to vector<8x128xf32>
    %4 = arith.mulf %3, %2 : vector<8x128xf32>
    %c0_2 = arith.constant 0 : index
    %c0_3 = arith.constant 0 : index
    %c0_4 = arith.constant 0 : index
    %5 = vector.load %arg3[%c0_2, %c0_3, %c0_4] : memref<1x8x256xf32, #tpu.memory_space<vmem>>, vector<1x8x256xf32>
    %6 = vector.shape_cast %5 : vector<1x8x256xf32> to vector<8x256xf32>
    %7 = vector.extract_strided_slice %6 {offsets = [0, 0], sizes = [8, 128], strides = [1, 1]} : vector<8x256xf32> to vector<8x128xf32>
    %cst_5 = arith.constant 5.000000e-01 : f32
    %8 = vector.broadcast %cst_5 : f32 to vector<8x128xf32>
    %9 = arith.mulf %8, %7 : vector<8x128xf32>
    %10 = arith.addf %4, %9 : vector<8x128xf32>
    %c255_i32 = arith.constant 255 : i32
    %11 = tpu.dynamic_rotate %1 by %c255_i32 dim 1 : vector<8x256xf32>, i32 -> vector<8x256xf32>
    %12 = vector.extract_strided_slice %11 {offsets = [0, 0], sizes = [8, 128], strides = [1, 1]} : vector<8x256xf32> to vector<8x128xf32>
    %cst_6 = arith.constant 2.500000e-01 : f32
    %13 = vector.broadcast %cst_6 : f32 to vector<8x128xf32>
    %14 = arith.mulf %13, %12 : vector<8x128xf32>
    %15 = arith.addf %10, %14 : vector<8x128xf32>
    %c0_7 = arith.constant 0 : index
    %c0_8 = arith.constant 0 : index
    %16 = vector.load %arg4[%c0_7, %c0_8] : memref<8x128xf32, #tpu.memory_space<vmem>>, vector<8x128xf32>
    tpu.vector_store %arg4[%c0_7, %c0_8], %15 {strides = array<i32>} : memref<8x128xf32, #tpu.memory_space<vmem>>, vector<8x128xf32>,
    return
  }
  func.func @transform_0(%arg0: i32, %arg1: i32) -> (i32, i32, i32) {
    %c0_i32 = arith.constant 0 : i32
    %c0_i32_0 = arith.constant 0 : i32
    return %arg1, %arg0, %c0_i32 : i32, i32, i32
  }
  func.func @transform_1(%arg0: i32, %arg1: i32) -> (i32, i32, i32) {
    %c0_i32 = arith.constant 0 : i32
    %c0_i32_0 = arith.constant 0 : i32
    return %arg1, %arg0, %c0_i32 : i32, i32, i32
  }
  func.func @transform_2(%arg0: i32, %arg1: i32) -> (i32, i32) {
    %c0_i32 = arith.constant 0 : i32
    return %arg0, %arg1 : i32, i32
  }
}

</mosaic_0001>

<bundles_post_ra>
// kernel: tpu_custom_call.1
= control target key start
LH: loop header
LB: loop body
LE: loop exit
PB: predicated region body
PF: predicated region fallthrough
CT: control target
= control target key end

     0   :  { %7 = vsyncpa [#allocation3], 0  ;;  %s200_s0 = inlined_call_operand.hbm [shape: f32[1,8,256], index: 0, kind: input, shape index: {}]   ;;  %s201_s1 = inlined_call_operand.hbm [shape: f32[1,8,256], index: 1, kind: input, shape index: {}]   ;;  %s202_s2 = inlined_call_operand.hbm [shape: f32[8,128], index: 2, kind: output, shape index: {}]  }
   0x1   :  { %8 = vsyncpa [#allocation6], 0 }
   0x2   :  { %9 = vsyncpa [#allocation4], 0  ;;  %s145_s9 = smov [#allocation2]   ;;  %s146_s11 = smov [#allocation5]  }
   0x3   :  { %s16_s10 = sshll.u32 %s145_s9, 4  ;;  %s26_s12 = sshll.u32 %s146_s11, 4  ;;  %s17_s10 = int_to_ptr.vmem [resolvable:$true] %s16_s10  ;;  %s27_s12 = int_to_ptr.vmem [resolvable:$true] %s26_s12 }
   0x4   :  { %s73_s15 = scalar_lea.hbm %s200_s0, 256 }
   0x5   :  { %p74_p0 = scmp.ne.s32.totalorder %s200_s0, %s73_s15  ;;  %p77_p1 = scmp.lt.u32.totalorder %s73_s15, %s200_s0 }
   0x7   :  { %p79_p2 = pnand %p77_p1, %p74_p0 }
   0x9   :  { %82 = shalt.err (!%p79_p2)
}
   0xa   :  { %s83_s20 = scalar_lea.vmem %s17_s10, 256  ;;  %p88_p4 = scmp.lt.s32.totalorder %s17_s10, %s17_s10 }
   0xb   :  { %p84_p3 = scmp.ne.s32.totalorder %s17_s10, %s83_s20  ;;  %p89_p5 = scmp.lt.s32.totalorder %s83_s20, %s83_s20 }
   0xd   :  { %p90_p6 = por %p89_p5, %p88_p4 }
   0xf   :  { %p91_p7 = pnand %p90_p6, %p84_p3 }
  0x11   :  { %94 = shalt.err (!%p91_p7)
}
  0x12   :  { %19 = dma.hbm_to_vmem [thread:$0]  %s200_s0, 256, %s17_s10, [#allocation3]  }
  0x13   :  { %s95_s25 = scalar_lea.hbm %s201_s1, 256 }
  0x14   :  { %p96_p8 = scmp.ne.s32.totalorder %s201_s1, %s95_s25  ;;  %p99_p9 = scmp.lt.u32.totalorder %s95_s25, %s201_s1 }
  0x16   :  { %p101_p10 = pnand %p99_p9, %p96_p8 }
  0x18   :  { %104 = shalt.err (!%p101_p10)
}
  0x19   :  { %s105_s30 = scalar_lea.vmem %s27_s12, 256  ;;  %p110_p12 = scmp.lt.s32.totalorder %s27_s12, %s27_s12 }
  0x1a   :  { %p106_p11 = scmp.ne.s32.totalorder %s27_s12, %s105_s30  ;;  %p111_p13 = scmp.lt.s32.totalorder %s105_s30, %s105_s30 }
  0x1c   :  { %p112_p0 = por %p111_p13, %p110_p12 }
  0x1e   :  { %p113_p1 = pnand %p112_p0, %p106_p11 }
  0x20   :  { %116 = shalt.err (!%p113_p1)
}
  0x21   :  { %29 = dma.hbm_to_vmem [thread:$0]  %s201_s1, 256, %s27_s12, [#allocation6]  }
  0x22   :  { %139 = dma.done.wait [#allocation3], 256  }
  0x23   :  { %140 = vsyncadd [#allocation3], 4294967040 }
  0x24   :  { %141 = dma.done.wait [#allocation6], 256  }
  0x25   :  { %142 = vsyncadd [#allocation6], 4294967040  ;;  %v36_v0 = vld [vmem:[#allocation2] sm:$0xff]  ;;  %s147_s4 = smov 127   ;;  %v37_v1 = vld [vmem:[#allocation2 + $0x8] sm:$0xff]  ;;  %v46_v2 = vlaneseq  ;;  %s148_s1 = smov [#allocation7]  }
  0x26   :  { %42 = vrot.lane.b32.xlu0 %v36_v0, %s147_s4  ;;  %v39_v3 = vld [vmem:[#allocation5] sm:$0xff]  ;;  %v38_v6 = vmul.f32 0.25, %v36_v0  ;;  %s59_s5 = sshll.u32 %s148_s1, 4  ;;  %s60_s5 = int_to_ptr.vmem [resolvable:$true] %s59_s5 }
  0x27   :  { %v47_v4 = vand.u32 127, %v46_v2  ;;  %v40_v5 = vmul.f32 0.5, %v39_v3  ;;  %s117_s6 = scalar_lea.vmem %s60_s5, 128  ;;  %p122_p3 = scmp.lt.s32.totalorder %s60_s5, %s60_s5 }
  0x28   :  { %p118_p2 = scmp.ne.s32.totalorder %s60_s5, %s117_s6  ;;  %p123_p4 = scmp.lt.s32.totalorder %s117_s6, %s117_s6 }
  0x29   :  { %vm48_vm0 = vcmp.lt.s32.totalorder %v47_v4, 127  ;;  %v41_v8 = vadd.f32 %v40_v5, %v38_v6 }
  0x2a   :  { %44 = vrot.lane.b32.xlu0 %v37_v1, %s147_s4  ;;  %p124_p5 = por %p123_p4, %p122_p3 }
  0x2c   :  { %p125_p6 = pnand %p124_p5, %p118_p2 }
  0x98   :  { %v43_v7 = vpop.permute.xlu0 %42 }
  0x9c   :  { %v45_v9 = vpop.permute.xlu0 %44 }
  0x9d   :  { %v49_v10 = vsel %vm48_vm0, %v43_v7, %v45_v9 }
  0x9e   :  { %v50_v11 = vmul.f32 0.25, %v49_v10 }
  0xa0   :  { %v51_v12 = vadd.f32 %v50_v11, %v41_v8 }
  0xa2   :  { %52 = vst [vmem:[#allocation7] sm:$0xff] %v51_v12 }
  0xa3   :  { %128 = shalt.err (!%p125_p6)
}
  0xa4   :  { %s129_s9 = scalar_lea.hbm %s202_s2, 128 }
  0xa5   :  { %p130_p7 = scmp.ne.s32.totalorder %s202_s2, %s129_s9  ;;  %p133_p8 = scmp.lt.u32.totalorder %s129_s9, %s202_s2 }
  0xa7   :  { %p135_p9 = pnand %p133_p8, %p130_p7 }
  0xa9   :  { %138 = shalt.err (!%p135_p9)
}
  0xaa   :  { %62 = dma.vmem_to_hbm [thread:$0]  %s60_s5, 128, %s202_s2, [#allocation4]  }
  0xab   :  { %143 = dma.done.wait [#allocation4], 128  }
  0xac   :  { %144 = vsyncadd [#allocation4], 4294967168 }
  0xad   :  { %66 = vsyncpa [#allocation3], 1 }
  0xae   :  { %67 = vsyncpa [#allocation6], 1 }
  0xaf   :  { %68 = vsyncpa [#allocation4], 1 }

</bundles_post_ra>
